<compile_context>
chip_gen: v7x
topology: tpu7x:2x2x1
jax: 0.10.0
libtpu: 0.0.40
codegen_flags: <defaults>
</compile_context>

<pallas_src>
import numpy as np
import jax
import jax.numpy as jnp
from jax.experimental import pallas as pl
from jax.experimental.pallas import tpu as pltpu

# ---- module hyper-parameters (from toy_example.py) ----
n_antenna = 64
n_beam = 2
n_rf = 4
n_stream = 1
batch = 8


def _round_up(n, m):
    return ((n + m - 1) // m) * m


def _pick_bt(b):
    """Batch-tile (lane) width.

    Tiny problems: one tile padded to a sublane multiple (8).
    Medium/large:  >= 2 tiles so the 'parallel' grid axis shards across v7x's
    two TensorCores, capped at 2048 lanes (x tile = 2048*128*4B = 1 MiB f32,
    2 MiB double-buffered -> fits every generation's scoped-VMEM default).
    """
    b8 = _round_up(b, 8)
    if b8 <= 256:
        return b8
    return max(128, min(2048, _round_up(-(-b8 // 2), 128)))


# ---------------- Pallas kernel ----------------
def hybrid_gain_kernel(w_ref, x_ref, o_ref):
    # w_ref: (2*n_stream*n_beam, 2*n_antenna)  flattened combiner rows, component-major
    # x_ref: (bt, 2*n_antenna)                 natural-layout channel tile
    # o_ref: (n_beam, bt)                      lane-dense per-beam power
    nb = o_ref.shape[0]
    ncomp = w_ref.shape[0] // nb
    # Single fused MXU push for all 2S real components; x tile transposed
    # in-kernel (XLU slot is idle here, hides under the input DMA).
    y = jnp.dot(w_ref[...], x_ref[...].T,
                preferred_element_type=jnp.float32)        # (2S*n_beam, bt) f32
    ysq = y * y                                            # VPU square
    acc = jnp.zeros(o_ref.shape, jnp.float32)
    for c in range(ncomp):                                 # static sublane-slice adds
        acc = acc + ysq[c * nb:(c + 1) * nb, :]
    o_ref[...] = acc


def hybrid_node_forward(x, w_comp, *, compute_dtype=jnp.float32):
    """x: (batch, 2*n_antenna) -> bf_gain: (batch, n_beam) f32.

    compute_dtype=jnp.bfloat16 is recommended at scale (memory-bound kernel);
    f32 kept as default so the toy-size 1e-4 correctness check holds.
    """
    b, two_na = x.shape
    n_comp = w_comp.shape[0]                               # = 2*n_stream
    bt = _pick_bt(b)
    n_tiles = pl.cdiv(b, bt)

    w_flat = w_comp.reshape(n_comp * n_beam, two_na).astype(compute_dtype)
    x_in = x.astype(compute_dtype)

    out_T = pl.pallas_call(
        hybrid_gain_kernel,
        out_shape=jax.ShapeDtypeStruct((n_beam, n_tiles * bt), jnp.float32),
        grid=(n_tiles,),
        in_specs=[
            # tiny combiner: constant index_map -> resident in VMEM across tiles
            pl.BlockSpec((n_comp * n_beam, two_na), lambda i: (0, 0)),
            # channel: streamed natural-layout batch tiles (double-buffered)
            pl.BlockSpec((bt, two_na), lambda i: (i, 0)),
        ],
        # lane-dense output: batch on the 128-lane axis -> unmasked stores
        out_specs=pl.BlockSpec((n_beam, bt), lambda i: (0, i)),
        compiler_params=pltpu.CompilerParams(
            dimension_semantics=("parallel",)),
    )(w_flat, x_in)

    # drop ragged-tile columns, tiny transpose back to (batch, n_beam) in XLA
    return jnp.transpose(out_T[:, :b])


# -------- deterministic parameter construction (plain JAX glue) --------
def build_params(key):
    k_theta, k_dr, k_di = jax.random.split(key, 3)
    # analog phase shifters: theta ~ U(0, 2*pi), constant modulus 1/sqrt(Na)
    theta = jax.random.uniform(
        k_theta, (n_beam, n_antenna, n_rf), minval=0.0, maxval=2.0 * np.pi,
        dtype=jnp.float32)
    f_analog = (jnp.cos(theta) + 1j * jnp.sin(theta)) / np.sqrt(n_antenna)
    # digital beamformer
    f_dig = (jax.random.normal(k_dr, (n_beam, n_rf, n_stream), dtype=jnp.float32)
             + 1j * jax.random.normal(k_di, (n_beam, n_rf, n_stream), dtype=jnp.float32)
             ) / np.sqrt(2.0)
    f_hyb = jnp.einsum("bar,brs->bas", f_analog, f_dig)    # (n_beam, Na, S) complex
    # per-beam power normalization: ||F_b||_F = sqrt(n_stream)
    fro = jnp.sqrt(jnp.sum(jnp.abs(f_hyb) ** 2, axis=(1, 2), keepdims=True))
    f_hyb = f_hyb * (np.sqrt(n_stream) / jnp.maximum(fro, 1e-12))

    # real combiner rows so that  w_re . [h_re; h_im] = Re(h @ F[:, :, s])
    #                             w_im . [h_re; h_im] = Im(h @ F[:, :, s])
    fre, fim = jnp.real(f_hyb), jnp.imag(f_hyb)             # (n_beam, Na, S)
    w_re = jnp.concatenate([fre, -fim], axis=1)             # (n_beam, 2*Na, S)
    w_im = jnp.concatenate([fim, fre], axis=1)               # (n_beam, 2*Na, S)
    w_parts = jnp.stack([w_re, w_im], axis=0)                # (2, n_beam, 2*Na, S)
    w_comp = jnp.transpose(w_parts, (3, 0, 1, 2)).reshape(
        2 * n_stream, n_beam, 2 * n_antenna)                 # (2*S, n_beam, 2*Na)
    return w_comp.astype(jnp.float32), f_hyb


# pure-JAX reference (complex domain) for correctness check
def reference_gain(x, f_hyb):
    h = x[:, :n_antenna] + 1j * x[:, n_antenna:]             # (batch, Na) complex
    bf_signal = jnp.einsum("ca,bas->cbs", h, f_hyb)          # (batch, n_beam, S)
    return jnp.sum(jnp.abs(bf_signal) ** 2, axis=-1)         # (batch, n_beam)


if __name__ == "__main__":
    key = jax.random.PRNGKey(0)
    kx, kp = jax.random.split(key)
    x = jax.random.normal(kx, (batch, 2 * n_antenna), dtype=jnp.float32)

    w_comp, f_hyb = build_params(kp)

    bf_gain = hybrid_node_forward(x, w_comp)
    bf_gain = jax.block_until_ready(bf_gain)

    assert bf_gain.shape == (batch, n_beam), bf_gain.shape
    ref = reference_gain(x, f_hyb)
    np.testing.assert_allclose(np.asarray(bf_gain), np.asarray(ref),
                               rtol=1e-4, atol=1e-5)
    print("KERNEL_OK")
</pallas_src>

<mosaic_0001>
module attributes {stable_mosaic.version = 11 : i64} {
  func.func @hybrid_gain_kernel(%arg0: i32, %arg1: memref<4x128xf32, #tpu.memory_space<vmem>>, %arg2: memref<8x128xf32, #tpu.memory_space<vmem>>, %arg3: memref<2x8xf32, #tpu.memory_space<vmem>>) attributes {dimension_semantics = [#tpu.dimension_semantics<parallel>], iteration_bounds = array<i64: 1>, scalar_prefetch = 0 : i64, scratch_operands = 0 : i64, tpu.core_type = #tpu.core_type<tc>, window_params = [{pipeline_mode = #tpu.pipeline_mode<synchronous>, transform_indices = @transform_0, window_bounds = array<i64: 4, 128>}, {transform_indices = @transform_1, window_bounds = array<i64: 8, 128>}, {transform_indices = @transform_2, window_bounds = array<i64: 2, 8>}]} {
    %c0 = arith.constant 0 : index
    %c0_0 = arith.constant 0 : index
    %0 = vector.load %arg1[%c0, %c0_0] : memref<4x128xf32, #tpu.memory_space<vmem>>, vector<4x128xf32>
    %c0_1 = arith.constant 0 : index
    %c0_2 = arith.constant 0 : index
    %1 = vector.load %arg2[%c0_1, %c0_2] : memref<8x128xf32, #tpu.memory_space<vmem>>, vector<8x128xf32>
    %2 = tpu.transpose %1, [1, 0] : vector<8x128xf32> -> vector<128x8xf32>
    %cst = arith.constant dense<0.000000e+00> : vector<4x8xf32>
    %3 = tpu.matmul %0, %2, %cst {dimension_numbers = #tpu.dot_dimension_numbers<[1], [0], [0], [1], [0, 0, 1, 1], [], []>} : vector<4x128xf32>, vector<128x8xf32>, vector<4x8xf32> -> vector<4x8xf32>
    %4 = arith.mulf %3, %3 : vector<4x8xf32>
    %cst_3 = arith.constant 0.000000e+00 : f32
    %5 = vector.broadcast %cst_3 : f32 to vector<2x8xf32>
    %6 = vector.extract_strided_slice %4 {offsets = [0, 0], sizes = [2, 8], strides = [1, 1]} : vector<4x8xf32> to vector<2x8xf32>
    %7 = arith.addf %5, %6 : vector<2x8xf32>
    %8 = vector.extract_strided_slice %4 {offsets = [2, 0], sizes = [2, 8], strides = [1, 1]} : vector<4x8xf32> to vector<2x8xf32>
    %9 = arith.addf %7, %8 : vector<2x8xf32>
    %c0_4 = arith.constant 0 : index
    %c0_5 = arith.constant 0 : index
    %10 = vector.load %arg3[%c0_4, %c0_5] : memref<2x8xf32, #tpu.memory_space<vmem>>, vector<2x8xf32>
    tpu.vector_store %arg3[%c0_4, %c0_5], %9 {strides = array<i32>} : memref<2x8xf32, #tpu.memory_space<vmem>>, vector<2x8xf32>,
    return
  }
  func.func @transform_0(%arg0: i32) -> (i32, i32) {
    %c0_i32 = arith.constant 0 : i32
    %c0_i32_0 = arith.constant 0 : i32
    %c0_i32_1 = arith.constant 0 : i32
    return %c0_i32, %c0_i32_0 : i32, i32
  }
  func.func @transform_1(%arg0: i32) -> (i32, i32) {
    %c0_i32 = arith.constant 0 : i32
    %c0_i32_0 = arith.constant 0 : i32
    return %arg0, %c0_i32 : i32, i32
  }
  func.func @transform_2(%arg0: i32) -> (i32, i32) {
    %c0_i32 = arith.constant 0 : i32
    %c0_i32_0 = arith.constant 0 : i32
    return %c0_i32, %arg0 : i32, i32
  }
}

</mosaic_0001>

<bundles_post_ra>
// kernel: tpu_custom_call.1
= control target key start
LH: loop header
LB: loop body
LE: loop exit
PB: predicated region body
PF: predicated region fallthrough
CT: control target
= control target key end

     0   :  { %7 = vsyncpa [#allocation3], 0  ;;  %s272_s0 = inlined_call_operand.hbm [shape: f32[4,128], index: 0, kind: input, shape index: {}]   ;;  %s273_s1 = inlined_call_operand.hbm [shape: f32[8,128], index: 1, kind: input, shape index: {}]   ;;  %s274_s2 = inlined_call_operand.hbm [shape: f32[2,8], index: 2, kind: output, shape index: {}]  }
   0x1   :  { %8 = vsyncpa [#allocation6], 0 }
   0x2   :  { %9 = vsyncpa [#allocation4], 0  ;;  %s216_s9 = smov [#allocation2]   ;;  %s217_s11 = smov [#allocation5]  }
   0x3   :  { %s16_s10 = sshll.u32 %s216_s9, 4  ;;  %s26_s12 = sshll.u32 %s217_s11, 4  ;;  %s17_s10 = int_to_ptr.vmem [resolvable:$true] %s16_s10  ;;  %s27_s12 = int_to_ptr.vmem [resolvable:$true] %s26_s12 }
   0x4   :  { %s144_s15 = scalar_lea.hbm %s272_s0, 64 }
   0x5   :  { %p145_p0 = scmp.ne.s32.totalorder %s272_s0, %s144_s15  ;;  %p148_p1 = scmp.lt.u32.totalorder %s144_s15, %s272_s0 }
   0x7   :  { %p150_p2 = pnand %p148_p1, %p145_p0 }
   0x9   :  { %153 = shalt.err (!%p150_p2)
}
   0xa   :  { %s154_s20 = scalar_lea.vmem %s17_s10, 64  ;;  %p159_p4 = scmp.lt.s32.totalorder %s17_s10, %s17_s10 }
   0xb   :  { %p155_p3 = scmp.ne.s32.totalorder %s17_s10, %s154_s20  ;;  %p160_p5 = scmp.lt.s32.totalorder %s154_s20, %s154_s20 }
   0xd   :  { %p161_p6 = por %p160_p5, %p159_p4 }
   0xf   :  { %p162_p7 = pnand %p161_p6, %p155_p3 }
  0x11   :  { %165 = shalt.err (!%p162_p7)
}
  0x12   :  { %19 = dma.hbm_to_vmem [thread:$0]  %s272_s0, 64, %s17_s10, [#allocation3]  }
  0x13   :  { %s166_s25 = scalar_lea.hbm %s273_s1, 128 }
  0x14   :  { %p167_p8 = scmp.ne.s32.totalorder %s273_s1, %s166_s25  ;;  %p170_p9 = scmp.lt.u32.totalorder %s166_s25, %s273_s1 }
  0x16   :  { %p172_p10 = pnand %p170_p9, %p167_p8 }
  0x18   :  { %175 = shalt.err (!%p172_p10)
}
  0x19   :  { %s176_s30 = scalar_lea.vmem %s27_s12, 128  ;;  %p181_p12 = scmp.lt.s32.totalorder %s27_s12, %s27_s12 }
  0x1a   :  { %p177_p11 = scmp.ne.s32.totalorder %s27_s12, %s176_s30  ;;  %p182_p13 = scmp.lt.s32.totalorder %s176_s30, %s176_s30 }
  0x1c   :  { %p183_p0 = por %p182_p13, %p181_p12 }
  0x1e   :  { %p184_p1 = pnand %p183_p0, %p177_p11 }
  0x20   :  { %187 = shalt.err (!%p184_p1)
}
  0x21   :  { %29 = dma.hbm_to_vmem [thread:$0]  %s273_s1, 128, %s27_s12, [#allocation6]  }
  0x22   :  { %210 = dma.done.wait [#allocation3], 64  }
  0x23   :  { %211 = vsyncadd [#allocation3], 4294967232 }
  0x24   :  { %212 = dma.done.wait [#allocation6], 128  }
  0x25   :  { %213 = vsyncadd [#allocation6], 4294967168  ;;  %v218_v0 = vmov 0.0   ;;  %vm219_vm0 = vmmov 0   ;;  %v37_v1 = vld [vmem:[#allocation5] sm:$0xff]  ;;  %s220_s4 = smov [#allocation7]  }
  0x26   :  { %134 = vmatprep.subr.mxu0 %v218_v0  ;;  %136 = vmatprep.mubr.msk.f32.mxu0 %vm219_vm0, %v218_v0  ;;  %v36_v2 = vld [vmem:[#allocation2] sm:$0xf]  ;;  %s122_s5 = sshll.u32 %s220_s4, 4  ;;  %vm114_vm1 = vcmask 58368   ;;  %s123_s5 = int_to_ptr.vmem [resolvable:$true] %s122_s5 }
  0x27   :  { %135 = vmatpush3.xpose.msra.mxu0 %v37_v1  ;;  %s188_s1 = scalar_lea.vmem %s123_s5, 32  ;;  %p193_p3 = scmp.lt.s32.totalorder %s123_s5, %s123_s5 }
  0x28   :  { %p189_p2 = scmp.ne.s32.totalorder %s123_s5, %s188_s1  ;;  %p194_p4 = scmp.lt.s32.totalorder %s188_s1, %s188_s1 }
  0x2a   :  { %137 = vmatmul.mubr.f32.vlgmr.msra.gmra.mrb[0].mxu0 %v36_v2  ;;  %p195_p5 = por %p194_p4, %p193_p3 }
  0x2c   :  { %p196_p6 = pnand %p195_p5, %p189_p2 }
  0xfd   :  { %v104_v3 = vpop.f32.mrb[0].mxu0 }
  0xfe   :  { %v108_v4 = vmul.f32 %v104_v3, %v104_v3  ;;  %v138_v5 = vpop.f32.mrb[1].mxu0 }
 0x100   :  { %v111_v6 = vrot.slane %v108_v4, 2 }
 0x102   :  { %v113_v7 = vadd.f32 %v111_v6, %v108_v4 }
 0x104   :  { %115 = vst.msk [vmem:[#allocation7] sm:$0x3] %vm114_vm1, %v113_v7 }
 0x105   :  { %199 = shalt.err (!%p196_p6)
}
 0x106   :  { %s200_s8 = scalar_lea.hbm %s274_s2, 32 }
 0x107   :  { %p201_p7 = scmp.ne.s32.totalorder %s274_s2, %s200_s8  ;;  %p204_p8 = scmp.lt.u32.totalorder %s200_s8, %s274_s2 }
 0x109   :  { %p206_p9 = pnand %p204_p8, %p201_p7 }
 0x10b   :  { %209 = shalt.err (!%p206_p9)
}
 0x10c   :  { %125 = dma.vmem_to_hbm [thread:$0]  %s123_s5, 32, %s274_s2, [#allocation4]  }
 0x10d   :  { %214 = dma.done.wait [#allocation4], 32  }
 0x10e   :  { %215 = vsyncadd [#allocation4], 4294967264 }
 0x10f   :  { %129 = vsyncpa [#allocation3], 1 }
 0x110   :  { %130 = vsyncpa [#allocation6], 1 }
 0x111   :  { %131 = vsyncpa [#allocation4], 1 }

</bundles_post_ra>
